<compile_context>
chip_gen: v7x
topology: tpu7x:2x2x1
jax: 0.10.0
libtpu: 0.0.40
codegen_flags: <defaults>
</compile_context>

<pallas_src>
import math

import jax
import jax.numpy as jnp
from jax.experimental import pallas as pl
from jax.experimental.pallas import tpu as pltpu


def _vmem_spec():
    return pl.BlockSpec(memory_space=pltpu.MemorySpace.VMEM)


# ----------------------------------------------------------------------------
# Kernel 1: Linear + ReLU (bias folded into the weight matrix).
# ----------------------------------------------------------------------------
def _linear_relu_kernel(x_ref, w_ref, o_ref):
    y = jnp.dot(x_ref[...], w_ref[...], preferred_element_type=jnp.float32)
    o_ref[...] = jnp.maximum(y, 0.0)


def _linear_relu(x, w_t, b):
    """ReLU(x @ w_t + b) with the bias folded into the matmul."""
    B = x.shape[0]
    x_aug = jnp.concatenate([x, jnp.ones((B, 1), x.dtype)], axis=1)      # (B, S+1)
    w_aug = jnp.concatenate([w_t, b.reshape(1, -1)], axis=0)             # (S+1, N)
    return pl.pallas_call(
        _linear_relu_kernel,
        out_shape=jax.ShapeDtypeStruct((B, w_t.shape[1]), jnp.float32),
        in_specs=[_vmem_spec(), _vmem_spec()],
        out_specs=_vmem_spec(),
    )(x_aug, w_aug)


# ----------------------------------------------------------------------------
# Kernel 2: fused stack of 3x3 "same" convolutions, each followed by ReLU.
#
# Feature maps are NHWC; each conv is computed as 9 shifted 2-D matmuls of
# shape (B*H*W, Cin) @ (Cin, Cout) accumulated in fp32.  Zero padding is
# built in VMEM scratch, so intermediates never leave VMEM.
# ----------------------------------------------------------------------------
def _make_conv_stack_kernel(channels, B, H, W):
    L = len(channels) - 1
    N = B * H * W

    def kernel(*refs):
        x_ref = refs[0]
        w_refs = refs[1:1 + L]          # each (3, 3, cin, cout)
        b_ref = refs[1 + L]             # (1, sum(cout))
        o_ref = refs[2 + L]             # (B, H, W, channels[-1])
        pad_refs = refs[3 + L:3 + 2 * L]

        cur = x_ref[...].astype(jnp.float32)       # (B, H, W, c0)
        off = 0
        for li in range(L):
            cin, cout = channels[li], channels[li + 1]
            pad = pad_refs[li]
            pad[...] = jnp.zeros_like(pad)                      # zero halo
            pad[:, 1:H + 1, 1:W + 1, :] = cur                   # interior

            acc = jnp.zeros((N, cout), dtype=jnp.float32)
            for dy in range(3):
                for dx in range(3):
                    win = pad[:, dy:dy + H, dx:dx + W, :]       # (B, H, W, cin)
                    win2 = win.reshape(N, cin)                  # lane dim kept
                    wtap = w_refs[li][dy, dx]                   # (cin, cout)
                    if cin == 1:
                        acc = acc + win2 * wtap                 # outer product
                    else:
                        acc = acc + jnp.dot(
                            win2, wtap, preferred_element_type=jnp.float32)

            bias = b_ref[:, off:off + cout]                     # (1, cout)
            cur = jnp.maximum(acc + bias, 0.0).reshape(B, H, W, cout)
            off += cout

        o_ref[...] = cur.astype(o_ref.dtype)

    return kernel


def _conv_stack(x, weights, biases):
    """Apply ReLU(conv3x3(.)) for each (w, b) pair, fused in one pallas_call."""
    B, H, W, c0 = x.shape
    channels = [c0] + [int(w.shape[-1]) for w in weights]
    L = len(weights)
    bias_cat = jnp.concatenate([b.reshape(1, -1) for b in biases], axis=1)

    kernel = _make_conv_stack_kernel(channels, B, H, W)
    scratch = [pltpu.VMEM((B, H + 2, W + 2, c), jnp.float32)
               for c in channels[:-1]]

    return pl.pallas_call(
        kernel,
        out_shape=jax.ShapeDtypeStruct((B, H, W, channels[-1]), jnp.float32),
        in_specs=[_vmem_spec()] * (L + 2),
        out_specs=_vmem_spec(),
        scratch_shapes=scratch,
    )(x, *weights, bias_cat)


# ----------------------------------------------------------------------------
# Layout plumbing (wrapper side).
# ----------------------------------------------------------------------------
def _pixel_shuffle_nhwc(x, r):
    # TODO(synk): PixelShuffle is pure layout plumbing; kept in the JAX wrapper
    # (reshape + transpose) rather than faked inside a kernel.
    B, H, W, C = x.shape
    F = C // (r * r)
    x = x.reshape(B, H, W, F, r, r)
    x = x.transpose(0, 1, 4, 2, 5, 3)          # (B, H, r, W, r, F)
    return x.reshape(B, H * r, W * r, F)


def generator_rain_forward(x, params, *, im_size, up_scale):
    H, W = im_size
    Hd, Wd = math.ceil(H / up_scale), math.ceil(W / up_scale)
    B = x.shape[0]

    h = _linear_relu(x, params["lin_w_t"], params["lin_b"])        # (B, Hd*Wd)
    img = h.reshape(B, Hd, Wd, 1)                                  # view()
    body = _conv_stack(img, params["conv_ws"][:4], params["conv_bs"][:4])
    up = _pixel_shuffle_nhwc(body, up_scale)
    out = _conv_stack(up, params["conv_ws"][4:], params["conv_bs"][4:])
    rain = out[:, :H, :W, :]                                       # crop
    return jnp.transpose(rain, (0, 3, 1, 2))                       # NCHW


# ----------------------------------------------------------------------------
# Parameters + pure-JAX reference.
# ----------------------------------------------------------------------------
def init_params(key, *, im_size, out_channels, filter_size, state_size,
                up_scale, num_feature):
    H, W = im_size
    Hd, Wd = math.ceil(H / up_scale), math.ceil(W / up_scale)
    keys = jax.random.split(key, 12)

    lin_w_t = (jax.random.normal(keys[0], (state_size, Hd * Wd), jnp.float32)
               / math.sqrt(state_size))
    lin_b = 0.01 * jax.random.normal(keys[1], (Hd * Wd,), jnp.float32)

    chans = [1, num_feature * 8, num_feature * 4, num_feature * 2,
             num_feature * up_scale ** 2]
    ios = list(zip(chans[:-1], chans[1:])) + [(num_feature, out_channels)]

    conv_ws, conv_bs = [], []
    ki = 2
    for cin, cout in ios:
        fan_in = cin * filter_size * filter_size
        w = (jax.random.normal(keys[ki], (filter_size, filter_size, cin, cout),
                               jnp.float32) / math.sqrt(fan_in))
        b = 0.01 * jax.random.normal(keys[ki + 1], (cout,), jnp.float32)
        conv_ws.append(w)
        conv_bs.append(b)
        ki += 2

    return dict(lin_w_t=lin_w_t, lin_b=lin_b, conv_ws=conv_ws, conv_bs=conv_bs)


def reference_forward(x, params, *, im_size, up_scale):
    H, W = im_size
    Hd, Wd = math.ceil(H / up_scale), math.ceil(W / up_scale)
    B = x.shape[0]
    dn = ("NHWC", "HWIO", "NHWC")

    def conv(t, w, b):
        y = jax.lax.conv_general_dilated(t, w, window_strides=(1, 1),
                                         padding="SAME", dimension_numbers=dn)
        return jax.nn.relu(y + b)

    h = jax.nn.relu(x @ params["lin_w_t"] + params["lin_b"])
    img = h.reshape(B, Hd, Wd, 1)
    for w, b in zip(params["conv_ws"][:4], params["conv_bs"][:4]):
        img = conv(img, w, b)
    img = _pixel_shuffle_nhwc(img, up_scale)
    img = conv(img, params["conv_ws"][4], params["conv_bs"][4])
    rain = img[:, :H, :W, :]
    return jnp.transpose(rain, (0, 3, 1, 2))


if __name__ == "__main__":
    # Small shapes consistent with the module (H=15 exercises the crop).
    B = 2
    im_size = (15, 16)
    up_scale = 2
    state_size = 32
    num_feature = 8
    out_channels = 3
    filter_size = 3

    key = jax.random.PRNGKey(0)
    kx, kp = jax.random.split(key)
    x = jax.random.normal(kx, (B, state_size), jnp.float32)
    params = init_params(kp, im_size=im_size, out_channels=out_channels,
                         filter_size=filter_size, state_size=state_size,
                         up_scale=up_scale, num_feature=num_feature)

    out = generator_rain_forward(x, params, im_size=im_size, up_scale=up_scale)
    out = jax.block_until_ready(out)

    ref = reference_forward(x, params, im_size=im_size, up_scale=up_scale)
    assert out.shape == (B, out_channels, im_size[0], im_size[1]), out.shape
    max_err = float(jnp.max(jnp.abs(out - ref)))
    assert jnp.allclose(out, ref, atol=1e-4, rtol=1e-4), max_err

    print("KERNEL_OK")
</pallas_src>

<mosaic_0001>
module attributes {stable_mosaic.version = 11 : i64} {
  func.func @_linear_relu_kernel(%arg0: memref<2x33xf32, #tpu.memory_space<vmem>>, %arg1: memref<33x64xf32, #tpu.memory_space<vmem>>, %arg2: memref<2x64xf32, #tpu.memory_space<vmem>>) attributes {dimension_semantics = [], scalar_prefetch = 0 : i64, scratch_operands = 0 : i64, tpu.core_type = #tpu.core_type<tc>} {
    %c0 = arith.constant 0 : index
    %c0_0 = arith.constant 0 : index
    %0 = vector.load %arg0[%c0, %c0_0] : memref<2x33xf32, #tpu.memory_space<vmem>>, vector<2x33xf32>
    %c0_1 = arith.constant 0 : index
    %c0_2 = arith.constant 0 : index
    %1 = vector.load %arg1[%c0_1, %c0_2] : memref<33x64xf32, #tpu.memory_space<vmem>>, vector<33x64xf32>
    %cst = arith.constant dense<0.000000e+00> : vector<2x64xf32>
    %2 = tpu.matmul %0, %1, %cst {dimension_numbers = #tpu.dot_dimension_numbers<[1], [0], [0], [1], [0, 0, 1, 1], [], []>} : vector<2x33xf32>, vector<33x64xf32>, vector<2x64xf32> -> vector<2x64xf32>
    %cst_3 = arith.constant 0.000000e+00 : f32
    %3 = vector.broadcast %cst_3 : f32 to vector<2x64xf32>
    %4 = arith.maximumf %2, %3 : vector<2x64xf32>
    %c0_4 = arith.constant 0 : index
    %c0_5 = arith.constant 0 : index
    %5 = vector.load %arg2[%c0_4, %c0_5] : memref<2x64xf32, #tpu.memory_space<vmem>>, vector<2x64xf32>
    tpu.vector_store %arg2[%c0_4, %c0_5], %4 {strides = array<i32>} : memref<2x64xf32, #tpu.memory_space<vmem>>, vector<2x64xf32>,
    return
  }
}

</mosaic_0001>

<bundles_post_ra>
// kernel: tpu_custom_call.1
= control target key start
LH: loop header
LB: loop body
LE: loop exit
PB: predicated region body
PF: predicated region fallthrough
CT: control target
= control target key end

     0   :  { %7 = vsyncpa [#allocation3], 0  ;;  %s314_s0 = inlined_call_operand.hbm [shape: f32[2,33], index: 0, kind: input, shape index: {}]   ;;  %s315_s1 = inlined_call_operand.hbm [shape: f32[33,64], index: 1, kind: input, shape index: {}]   ;;  %s316_s2 = inlined_call_operand.hbm [shape: f32[2,64], index: 2, kind: output, shape index: {}]  }
   0x1   :  { %8 = vsyncpa [#allocation6], 0 }
   0x2   :  { %9 = vsyncpa [#allocation4], 0  ;;  %s248_s9 = smov [#allocation2]   ;;  %s249_s11 = smov [#allocation5]  }
   0x3   :  { %s16_s10 = sshll.u32 %s248_s9, 4  ;;  %s25_s12 = sshll.u32 %s249_s11, 4  ;;  %s17_s10 = int_to_ptr.vmem [resolvable:$true] %s16_s10  ;;  %s271_s12 = int_to_ptr.vmem [resolvable:$true] %s25_s12 }
   0x4   :  { %s176_s15 = scalar_lea.hbm %s314_s0, 32 }
   0x5   :  { %p177_p0 = scmp.ne.s32.totalorder %s314_s0, %s176_s15  ;;  %p180_p1 = scmp.lt.u32.totalorder %s176_s15, %s314_s0 }
   0x7   :  { %p182_p2 = pnand %p180_p1, %p177_p0 }
   0x9   :  { %185 = shalt.err (!%p182_p2)
}
   0xa   :  { %s186_s20 = scalar_lea.vmem %s17_s10, 32  ;;  %p191_p4 = scmp.lt.s32.totalorder %s17_s10, %s17_s10 }
   0xb   :  { %p187_p3 = scmp.ne.s32.totalorder %s17_s10, %s186_s20  ;;  %p192_p5 = scmp.lt.s32.totalorder %s186_s20, %s186_s20 }
   0xd   :  { %p193_p6 = por %p192_p5, %p191_p4 }
   0xf   :  { %p194_p7 = pnand %p193_p6, %p187_p3 }
  0x11   :  { %197 = shalt.err (!%p194_p7)
}
  0x12   :  { %19 = dma.hbm_to_vmem [thread:$0]  %s314_s0, 32, %s17_s10, [#allocation3]  }
  0x13   :  { %s198_s25 = scalar_lea.hbm %s315_s1, 640 }
  0x14   :  { %p199_p8 = scmp.ne.s32.totalorder %s315_s1, %s198_s25  ;;  %p202_p9 = scmp.lt.u32.totalorder %s198_s25, %s315_s1 }
  0x16   :  { %p204_p10 = pnand %p202_p9, %p199_p8 }
  0x18   :  { %207 = shalt.err (!%p204_p10)
}
  0x19   :  { %s208_s30 = scalar_lea.vmem %s271_s12, 640  ;;  %p213_p12 = scmp.lt.s32.totalorder %s271_s12, %s271_s12 }
  0x1a   :  { %p209_p11 = scmp.ne.s32.totalorder %s271_s12, %s208_s30  ;;  %p214_p13 = scmp.lt.s32.totalorder %s208_s30, %s208_s30 }
  0x1c   :  { %p215_p0 = por %p214_p13, %p213_p12 }
  0x1e   :  { %p216_p1 = pnand %p215_p0, %p209_p11 }
  0x20   :  { %219 = shalt.err (!%p216_p1)
}
  0x21   :  { %s250_s0 = smov 128   ;;  %s251_s3 = smov 8  }
  0x22   :  { %31 = dma.hbm_to_vmem [thread:$0]  %s315_s1, 640, %s271_s12, [#allocation6], %s250_s0, %s250_s0, %s251_s3  }
  0x23   :  { %242 = dma.done.wait [#allocation3], 32  }
  0x24   :  { %243 = vsyncadd [#allocation3], 4294967264 }
  0x25   :  { %244 = dma.done.wait [#allocation6], 640  }
  0x26   :  { %245 = vsyncadd [#allocation6], 4294966656  ;;  %v252_v0 = vmov 0.0|0.0   ;;  %vm253_vm0 = vmmov 0   ;;  %v254_v1 = vmov 0.0   ;;  %v39_v2 = vld [vmem:[#allocation5] sm:$0xff] }
  0x27   :  { %162 = vmatprep.subr.bf16.mxu0 %v252_v0  ;;  %159 = vmatprep.mubr.msk.f32.mxu0 %vm253_vm0, %v254_v1  ;;  %v40_v3 = vld [vmem:[#allocation5 + $0x8] sm:$0xff]  ;;  %v41_v4 = vld [vmem:[#allocation5 + $0x10] sm:$0xff]  ;;  %v42_v6 = vld [vmem:[#allocation5 + $0x18] sm:$0xff]  ;;  %vm48_vm1 = vcmask 1040384   ;;  %vm44_vm2 = vcmask 269312   ;;  %s255_s1 = smov [#allocation7]  }
  0x28   :  { %v163_v5 = vpack.c.bf16 %v40_v3, %v39_v2  ;;  %v166_v7 = vpack.c.bf16 %v42_v6, %v41_v4  ;;  %v43_v8 = vld [vmem:[#allocation5 + $0x20] sm:$0x1]  ;;  %v38_v9 = vld [vmem:[#allocation2] sm:$0x3]  ;;  %s131_s6 = sshll.u32 %s255_s1, 4  ;;  %vm123_vm3 = vcmask 517120   ;;  %s132_s6 = int_to_ptr.vmem [resolvable:$true] %s131_s6 }
  0x29   :  { %s220_s7 = scalar_lea.vmem %s132_s6, 32  ;;  %p225_p3 = scmp.lt.s32.totalorder %s132_s6, %s132_s6 }
  0x2a   :  { %164 = vmatpush3.bf16.msra.mxu0 %v163_v5  ;;  %p221_p2 = scmp.ne.s32.totalorder %s132_s6, %s220_s7  ;;  %p226_p4 = scmp.lt.s32.totalorder %s220_s7, %s220_s7 }
  0x2b   :  { %165 = vmatprep.subr.bf16.mxu0 %v252_v0 }
  0x2c   :  { %p227_p5 = por %p226_p4, %p225_p3 }
  0x2e   :  { %167 = vmatpush3.bf16.msra.mxu0 %v166_v7  ;;  %p228_p6 = pnand %p227_p5, %p221_p2 }
  0x2f   :  { %157 = vmatprep.subr.mxu0 %v254_v1 }
  0x32   :  { %158 = vmatpush3.msk.msra.mxu0 %vm48_vm1, %v43_v8 }
  0x33   :  { %160 = vmatmul.mubr.msk.f32.vlgmr.msra.gmra.mrb[0].mxu0 %vm44_vm2, %v38_v9 }
 0x106   :  { %v118_v10 = vpop.f32.mrb[0].mxu0 }
 0x107   :  { %v122_v11 = vmax.f32 %v118_v10, 0.0  ;;  %v161_v12 = vpop.f32.mrb[1].mxu0 }
 0x109   :  { %124 = vst.msk [vmem:[#allocation7] sm:$0x3] %vm123_vm3, %v122_v11 }
 0x10a   :  { %231 = shalt.err (!%p228_p6)
}
 0x10b   :  { %s232_s10 = scalar_lea.hbm %s316_s2, 32 }
 0x10c   :  { %p233_p7 = scmp.ne.s32.totalorder %s316_s2, %s232_s10  ;;  %p236_p8 = scmp.lt.u32.totalorder %s232_s10, %s316_s2 }
 0x10e   :  { %p238_p9 = pnand %p236_p8, %p233_p7 }
 0x110   :  { %241 = shalt.err (!%p238_p9)
}
 0x111   :  { %134 = dma.vmem_to_hbm [thread:$0]  %s132_s6, 32, %s316_s2, [#allocation4]  }
 0x112   :  { %246 = dma.done.wait [#allocation4], 32  }
 0x113   :  { %247 = vsyncadd [#allocation4], 4294967264 }
 0x114   :  { %138 = vsyncpa [#allocation3], 1 }
 0x115   :  { %139 = vsyncpa [#allocation6], 1 }
 0x116   :  { %140 = vsyncpa [#allocation4], 1 }

</bundles_post_ra>
